<compile_context>
chip_gen: v7x
topology: tpu7x:2x2x1
jax: 0.10.0
libtpu: 0.0.40
codegen_flags: <defaults>
</compile_context>

<pallas_src>
import functools

import numpy as np
import jax
import jax.numpy as jnp
from jax.experimental import pallas as pl
from jax.experimental.pallas import tpu as pltpu


# --------------------------- model hyper-parameters (small) ---------------------------
def find_multiple(n: int, k: int) -> int:
    if n % k == 0:
        return n
    return n + k - n % k


B = 2                                   # batch
S = 8                                   # seqlen
D = 64                                  # model dim
MULTIPLE_OF = 256
HID = find_multiple(int(2 * (4 * D) / 3), MULTIPLE_OF)   # = 256  (ModelArgs.__post_init__)

LANE = 128                              # TPU lane width


# --------------------------------- Pallas kernel --------------------------------------
def ffn_kernel(x_ref, w13_ref, w2_ref, o_ref, *, hidden_dim):
    # x_ref:   (TM, DP)      bf16 tokens (DP = model dim padded to 128 lanes)
    # w13_ref: (DP, 2*HID)   bf16 fused [w1^T | w3^T]
    # w2_ref:  (HID, DP)     bf16 w2^T, output dim padded to 128 lanes
    # o_ref:   (TM, DP)      f32 output (lane-dense, unmasked stores)
    x = x_ref[...]                                                        # already bf16

    # Single fused, lane-dense up-projection (2*HID is a multiple of 128).
    gu = jnp.dot(x, w13_ref[...], preferred_element_type=jnp.float32)    # (TM, 2*HID) f32
    g = gu[:, :hidden_dim]                                                # tile-aligned slices
    u = gu[:, hidden_dim:]

    # SwiGLU gating in f32 (VPU/EUP path; v5e has no bf16 VPU/EUP).
    h = (g * jax.nn.sigmoid(g)) * u                                       # (TM, HID) f32

    # Down-projection, f32 accumulation, lane-dense (TM, DP) store.
    o_ref[...] = jnp.dot(h.astype(w2_ref.dtype), w2_ref[...],
                         preferred_element_type=jnp.float32).astype(o_ref.dtype)


# ------------------------------------ wrapper ------------------------------------------
def feed_forward_pallas(x, w1, w2, w3, *, block_tokens=None, matmul_dtype=jnp.bfloat16):
    """x: (B, S, D) f32; w1,w3: (HID, D); w2: (D, HID)  (PyTorch nn.Linear layout)."""
    bsz, seq, dim = x.shape
    hid = w1.shape[0]
    n_tok = bsz * seq
    assert n_tok % 8 == 0, "token count must be a multiple of 8 (sublane tiling)"
    assert hid % 128 == 0, "hidden_dim must be a multiple of 128 for tile-aligned gu slices"

    # Pad the model dim to a full 128-lane vreg (zeros are free on the MXU K dim and
    # make the output store unmasked / lane-dense).
    dim_p = find_multiple(dim, LANE)
    pad_d = dim_p - dim

    # Collapse batch into the sublane axis; cast to bf16 in the wrapper (halves x DMA).
    x2d = x.reshape(n_tok, dim).astype(matmul_dtype)
    if pad_d:
        x2d = jnp.pad(x2d, ((0, 0), (0, pad_d)))                          # (N, dim_p)

    # Fuse w1 / w3 into a single (dim_p, 2*HID) weight; pre-transpose; cast to bf16.
    # TODO(synk): on v7x consider fp8 weight casts here (MXU-native); keep bf16 on v5e/v6e.
    w13_t = jnp.concatenate([w1.T, w3.T], axis=1).astype(matmul_dtype)    # (D, 2*HID)
    if pad_d:
        w13_t = jnp.pad(w13_t, ((0, pad_d), (0, 0)))                      # (dim_p, 2*HID)
    w2_t = w2.T.astype(matmul_dtype)                                      # (HID, D)
    if pad_d:
        w2_t = jnp.pad(w2_t, ((0, 0), (0, pad_d)))                        # (HID, dim_p)

    if block_tokens is None:
        # At TM=512 the f32 gu/h intermediates are ~1.5 MB even for larger HID, so this
        # fits comfortably in VMEM on all generations; at the toy size this is one step.
        block_tokens = n_tok if n_tok <= 512 else 512
    assert n_tok % block_tokens == 0 and block_tokens % 8 == 0
    grid = (n_tok // block_tokens,)
    # Note: with grid=(1,) at toy sizes one v7x TensorCore is idle; for large n_tok the
    # "parallel" token axis naturally yields >= 2 steps and shards across both cores.

    kernel = functools.partial(ffn_kernel, hidden_dim=hid)

    # TODO(synk): for production D/HID the fully-resident-weight design must gain a
    # hidden-dim grid axis ("arbitrary", f32 VMEM accumulator + pl.when init/finalize)
    # to fit v7x's 64 MiB VMEM and hide weight DMA behind MXU work.
    out = pl.pallas_call(
        kernel,
        out_shape=jax.ShapeDtypeStruct((n_tok, dim_p), x.dtype),
        grid=grid,
        in_specs=[
            pl.BlockSpec((block_tokens, dim_p), lambda i: (i, 0)),        # token tile
            pl.BlockSpec((dim_p, 2 * hid), lambda i: (0, 0),              # fused w1|w3,
                         pipeline_mode=pl.Buffered(buffer_count=1)),      #  resident, 1 buf
            pl.BlockSpec((hid, dim_p), lambda i: (0, 0),                  # w2, resident
                         pipeline_mode=pl.Buffered(buffer_count=1)),
        ],
        out_specs=pl.BlockSpec((block_tokens, dim_p), lambda i: (i, 0)),
        compiler_params=pltpu.CompilerParams(
            dimension_semantics=("parallel",),
            vmem_limit_bytes=32 * 1024 * 1024,
        ),
    )(x2d, w13_t, w2_t)

    if pad_d:
        out = out[:, :dim]
    return out.reshape(bsz, seq, dim)


# ---------------------------- plain-JAX reference (PyTorch semantics) -------------------
def ref_forward(x, w1, w2, w3):
    g = x @ w1.T
    u = x @ w3.T
    return (g * jax.nn.sigmoid(g) * u) @ w2.T


# -------------------------------------- main --------------------------------------------
if __name__ == "__main__":
    key = jax.random.PRNGKey(0)
    ks = jax.random.split(key, 4)

    def init(k, shape, scale=0.05):
        return (scale * jax.random.normal(k, shape)).astype(jnp.float32)

    w1 = init(ks[0], (HID, D))      # nn.Linear(dim, hidden_dim, bias=False).weight
    w2 = init(ks[1], (D, HID))      # nn.Linear(hidden_dim, dim, bias=False).weight
    w3 = init(ks[2], (HID, D))      # nn.Linear(dim, hidden_dim, bias=False).weight
    x = jax.random.normal(ks[3], (B, S, D), dtype=jnp.float32)

    out = feed_forward_pallas(x, w1, w2, w3)
    out = jax.block_until_ready(out)

    ref = jax.block_until_ready(ref_forward(x, w1, w2, w3))
    # Tolerance is looser than pure-f32 because matmul operands are bf16 (f32 accumulation).
    np.testing.assert_allclose(np.asarray(out), np.asarray(ref), rtol=2e-2, atol=2e-2)

    print("KERNEL_OK")
</pallas_src>

<mosaic_0001>
module attributes {stable_mosaic.version = 11 : i64} {
  func.func @ffn_kernel(%arg0: i32, %arg1: memref<16x128xbf16, #tpu.memory_space<vmem>>, %arg2: memref<128x512xbf16, #tpu.memory_space<vmem>>, %arg3: memref<256x128xbf16, #tpu.memory_space<vmem>>, %arg4: memref<16x128xf32, #tpu.memory_space<vmem>>) attributes {dimension_semantics = [#tpu.dimension_semantics<parallel>], iteration_bounds = array<i64: 1>, scalar_prefetch = 0 : i64, scratch_operands = 0 : i64, tpu.core_type = #tpu.core_type<tc>, window_params = [{transform_indices = @transform_0, window_bounds = array<i64: 16, 128>}, {pipeline_mode = #tpu.pipeline_mode<synchronous>, transform_indices = @transform_1, window_bounds = array<i64: 128, 512>}, {pipeline_mode = #tpu.pipeline_mode<synchronous>, transform_indices = @transform_2, window_bounds = array<i64: 256, 128>}, {transform_indices = @transform_3, window_bounds = array<i64: 16, 128>}]} {
    %c0 = arith.constant 0 : index
    %c0_0 = arith.constant 0 : index
    %0 = vector.load %arg1[%c0, %c0_0] : memref<16x128xbf16, #tpu.memory_space<vmem>>, vector<16x128xbf16>
    %c0_1 = arith.constant 0 : index
    %c0_2 = arith.constant 0 : index
    %1 = vector.load %arg2[%c0_1, %c0_2] : memref<128x512xbf16, #tpu.memory_space<vmem>>, vector<128x512xbf16>
    %cst = arith.constant dense<0.000000e+00> : vector<16x512xf32>
    %2 = tpu.matmul %0, %1, %cst {dimension_numbers = #tpu.dot_dimension_numbers<[1], [0], [0], [1], [0, 0, 1, 1], [], []>} : vector<16x128xbf16>, vector<128x512xbf16>, vector<16x512xf32> -> vector<16x512xf32>
    %3 = vector.extract_strided_slice %2 {offsets = [0, 0], sizes = [16, 256], strides = [1, 1]} : vector<16x512xf32> to vector<16x256xf32>
    %4 = vector.extract_strided_slice %2 {offsets = [0, 256], sizes = [16, 256], strides = [1, 1]} : vector<16x512xf32> to vector<16x256xf32>
    %5 = arith.negf %3 : vector<16x256xf32>
    %6 = math.exp %5 : vector<16x256xf32>
    %cst_3 = arith.constant 1.000000e+00 : f32
    %7 = vector.broadcast %cst_3 : f32 to vector<16x256xf32>
    %8 = arith.addf %7, %6 : vector<16x256xf32>
    %9 = arith.divf %7, %8 : vector<16x256xf32>
    %10 = arith.mulf %3, %9 : vector<16x256xf32>
    %11 = arith.mulf %10, %4 : vector<16x256xf32>
    %12 = arith.truncf %11 : vector<16x256xf32> to vector<16x256xbf16>
    %c0_4 = arith.constant 0 : index
    %c0_5 = arith.constant 0 : index
    %13 = vector.load %arg3[%c0_4, %c0_5] : memref<256x128xbf16, #tpu.memory_space<vmem>>, vector<256x128xbf16>
    %cst_6 = arith.constant dense<0.000000e+00> : vector<16x128xf32>
    %14 = tpu.matmul %12, %13, %cst_6 {dimension_numbers = #tpu.dot_dimension_numbers<[1], [0], [0], [1], [0, 0, 1, 1], [], []>} : vector<16x256xbf16>, vector<256x128xbf16>, vector<16x128xf32> -> vector<16x128xf32>
    %c0_7 = arith.constant 0 : index
    %c0_8 = arith.constant 0 : index
    %15 = vector.load %arg4[%c0_7, %c0_8] : memref<16x128xf32, #tpu.memory_space<vmem>>, vector<16x128xf32>
    tpu.vector_store %arg4[%c0_7, %c0_8], %14 {strides = array<i32>} : memref<16x128xf32, #tpu.memory_space<vmem>>, vector<16x128xf32>,
    return
  }
  func.func @transform_0(%arg0: i32) -> (i32, i32) {
    %c0_i32 = arith.constant 0 : i32
    %c0_i32_0 = arith.constant 0 : i32
    return %arg0, %c0_i32 : i32, i32
  }
  func.func @transform_1(%arg0: i32) -> (i32, i32) {
    %c0_i32 = arith.constant 0 : i32
    %c0_i32_0 = arith.constant 0 : i32
    %c0_i32_1 = arith.constant 0 : i32
    return %c0_i32, %c0_i32_0 : i32, i32
  }
  func.func @transform_2(%arg0: i32) -> (i32, i32) {
    %c0_i32 = arith.constant 0 : i32
    %c0_i32_0 = arith.constant 0 : i32
    %c0_i32_1 = arith.constant 0 : i32
    return %c0_i32, %c0_i32_0 : i32, i32
  }
  func.func @transform_3(%arg0: i32) -> (i32, i32) {
    %c0_i32 = arith.constant 0 : i32
    %c0_i32_0 = arith.constant 0 : i32
    return %arg0, %c0_i32 : i32, i32
  }
}

</mosaic_0001>

<bundles_post_ra>
// kernel: tpu_custom_call.1
= control target key start
LH: loop header
LB: loop body
LE: loop exit
PB: predicated region body
PF: predicated region fallthrough
CT: control target
= control target key end

     0   :  { %8 = vsyncpa [#allocation3], 0  ;;  %s906_s0 = inlined_call_operand.hbm [shape: bf16[16,128], index: 0, kind: input, shape index: {}]   ;;  %s907_s1 = inlined_call_operand.hbm [shape: bf16[128,512], index: 1, kind: input, shape index: {}]   ;;  %s908_s2 = inlined_call_operand.hbm [shape: bf16[256,128], index: 2, kind: input, shape index: {}]   ;;  %s909_s3 = inlined_call_operand.hbm [shape: f32[16,128], index: 3, kind: output, shape index: {}]  }
   0x1   :  { %9 = vsyncpa [#allocation6], 0 }
   0x2   :  { %10 = vsyncpa [#allocation4], 0  ;;  %s827_s12 = smov [#allocation5]   ;;  %s733_s16 = scalar_lea.hbm %s907_s1, 4096 }
   0x3   :  { %s28_s13 = sshll.u32 %s827_s12, 4  ;;  %p734_p0 = scmp.ne.s32.totalorder %s907_s1, %s733_s16  ;;  %s29_s13 = int_to_ptr.vmem [resolvable:$true] %s28_s13 }
   0x4   :  { %p737_p1 = scmp.lt.u32.totalorder %s733_s16, %s907_s1 }
   0x6   :  { %p739_p2 = pnand %p737_p1, %p734_p0 }
   0x8   :  { %742 = shalt.err (!%p739_p2)
}
   0x9   :  { %s743_s21 = scalar_lea.vmem %s29_s13, 4096  ;;  %p748_p4 = scmp.lt.s32.totalorder %s29_s13, %s29_s13 }
   0xa   :  { %p744_p3 = scmp.ne.s32.totalorder %s29_s13, %s743_s21  ;;  %p749_p5 = scmp.lt.s32.totalorder %s743_s21, %s743_s21 }
   0xc   :  { %p750_p6 = por %p749_p5, %p748_p4 }
   0xe   :  { %p751_p7 = pnand %p750_p6, %p744_p3 }
  0x10   :  { %754 = shalt.err (!%p751_p7)
}
  0x11   :  { %s828_s22 = smov 256   ;;  %s829_s23 = smov 16  }
  0x12   :  { %34 = dma.hbm_to_vmem [thread:$0]  %s907_s1, 4096, %s29_s13, [#allocation6], %s828_s22, %s828_s22, %s829_s23  }
  0x13   :  { %s830_s26 = smov [#allocation2]   ;;  %s755_s30 = scalar_lea.hbm %s906_s0, 128 }
  0x14   :  { %s16_s27 = sshll.u32 %s830_s26, 4  ;;  %p756_p8 = scmp.ne.s32.totalorder %s906_s0, %s755_s30  ;;  %s17_s27 = int_to_ptr.vmem [resolvable:$true] %s16_s27 }
  0x15   :  { %p759_p9 = scmp.lt.u32.totalorder %s755_s30, %s906_s0 }
  0x17   :  { %p761_p10 = pnand %p759_p9, %p756_p8 }
  0x19   :  { %764 = shalt.err (!%p761_p10)
}
  0x1a   :  { %s765_s8 = scalar_lea.vmem %s17_s27, 128  ;;  %p770_p12 = scmp.lt.s32.totalorder %s17_s27, %s17_s27 }
  0x1b   :  { %p766_p11 = scmp.ne.s32.totalorder %s17_s27, %s765_s8  ;;  %p771_p13 = scmp.lt.s32.totalorder %s765_s8, %s765_s8 }
  0x1d   :  { %p772_p0 = por %p771_p13, %p770_p12 }
  0x1f   :  { %p773_p1 = pnand %p772_p0, %p766_p11 }
  0x21   :  { %776 = shalt.err (!%p773_p1)
}
  0x22   :  { %s831_s1 = smov 64   ;;  %s832_s9 = smov 4  }
  0x23   :  { %22 = dma.hbm_to_vmem [thread:$0]  %s906_s0, 128, %s17_s27, [#allocation3], %s831_s1, %s831_s1, %s832_s9  }
  0x24   :  { %s833_s12 = smov [#allocation7]   ;;  %s777_s16 = scalar_lea.hbm %s908_s2, 2048 }
  0x25   :  { %s40_s13 = sshll.u32 %s833_s12, 4  ;;  %p778_p2 = scmp.ne.s32.totalorder %s908_s2, %s777_s16  ;;  %s41_s13 = int_to_ptr.vmem [resolvable:$true] %s40_s13 }
  0x26   :  { %p781_p3 = scmp.lt.u32.totalorder %s777_s16, %s908_s2 }
  0x28   :  { %p783_p4 = pnand %p781_p3, %p778_p2 }
  0x2a   :  { %786 = shalt.err (!%p783_p4)
}
  0x2b   :  { %s787_s21 = scalar_lea.vmem %s41_s13, 2048  ;;  %p792_p6 = scmp.lt.s32.totalorder %s41_s13, %s41_s13 }
  0x2c   :  { %p788_p5 = scmp.ne.s32.totalorder %s41_s13, %s787_s21  ;;  %p793_p7 = scmp.lt.s32.totalorder %s787_s21, %s787_s21 }
  0x2e   :  { %p794_p8 = por %p793_p7, %p792_p6 }
  0x30   :  { %p795_p9 = pnand %p794_p8, %p788_p5 }
  0x32   :  { %798 = shalt.err (!%p795_p9)
}
  0x33   :  { %46 = dma.hbm_to_vmem [thread:$0]  %s908_s2, 2048, %s41_s13, [#allocation6], %s831_s1, %s831_s1, %s832_s9  }
  0x34   :  { %821 = dma.done.wait [#allocation3], 128  }
  0x35   :  { %822 = vsyncadd [#allocation3], 4294967168 }
  0x36   :  { %823 = dma.done.wait [#allocation6], 6144  }
  0x37   :  { %824 = vsyncadd [#allocation6], 4294961152  ;;  %v834_v0 = vmov 0   ;;  %v652_v1 = vld [vmem:[#allocation5 + $0x4] ss:$16 sps:$4 sm:$0xff]   ;;  %v682_v29 = vld [vmem:[#allocation2] sm:$0xff]  }
  0x38   :  { %289 = vmatprep.mubr.bf16.mxu0 %v834_v0  ;;  %332 = vmatprep.mubr.bf16.mxu1 %v834_v0  ;;  %v654_v2 = vld [vmem:[#allocation5] ss:$16 sps:$4 sm:$0xff]   ;;  %v655_v3 = vld [vmem:[#allocation5 + $0x24] ss:$16 sps:$4 sm:$0xff]   ;;  %v673_v8 = vld [vmem:[#allocation5 + $0xc] ss:$16 sps:$4 sm:$0xff]  }
  0x39   :  { %257 = vmatprep.subr.bf16.mxu0 %v652_v1  ;;  %v657_v4 = vld [vmem:[#allocation5 + $0x20] ss:$16 sps:$4 sm:$0xff]   ;;  %v658_v5 = vld [vmem:[#allocation5 + $0x44] ss:$16 sps:$4 sm:$0xff]   ;;  %v675_v9 = vld [vmem:[#allocation5 + $0x8] ss:$16 sps:$4 sm:$0xff]   ;;  %300 = vmatprep.subr.bf16.mxu1 %v673_v8 }
  0x3a   :  { %258 = vmatpush1.bf16.msra.mxu0 %v654_v2  ;;  %v660_v6 = vld [vmem:[#allocation5 + $0x40] ss:$16 sps:$4 sm:$0xff]   ;;  %v661_v7 = vld [vmem:[#allocation5 + $0x64] ss:$16 sps:$4 sm:$0xff]   ;;  %v679_v12 = vld [vmem:[#allocation5 + $0x2c] ss:$16 sps:$4 sm:$0xff]   ;;  %301 = vmatpush1.bf16.msra.mxu1 %v675_v9 }
  0x3b   :  { %259 = vmatprep.subr.bf16.mxu0 %v655_v3  ;;  %v663_v10 = vld [vmem:[#allocation5 + $0x60] ss:$16 sps:$4 sm:$0xff]   ;;  %v664_v11 = vld [vmem:[#allocation5 + $0x84] ss:$16 sps:$4 sm:$0xff]   ;;  %v681_v13 = vld [vmem:[#allocation5 + $0x28] ss:$16 sps:$4 sm:$0xff]   ;;  %302 = vmatprep.subr.bf16.mxu1 %v679_v12 }
  0x3c   :  { %v666_v14 = vld [vmem:[#allocation5 + $0x80] ss:$16 sps:$4 sm:$0xff]   ;;  %v683_v15 = vld [vmem:[#allocation5 + $0x4c] ss:$16 sps:$4 sm:$0xff]   ;;  %v667_v16 = vld [vmem:[#allocation5 + $0xa4] ss:$16 sps:$4 sm:$0xff]  }
  0x3d   :  { %v685_v17 = vld [vmem:[#allocation5 + $0x48] ss:$16 sps:$4 sm:$0xff]   ;;  %v686_v18 = vld [vmem:[#allocation5 + $0x6c] ss:$16 sps:$4 sm:$0xff]   ;;  %v669_v19 = vld [vmem:[#allocation5 + $0xa0] ss:$16 sps:$4 sm:$0xff]  }
  0x3e   :  { %260 = vmatpush1.bf16.msra.mxu0 %v657_v4  ;;  %303 = vmatpush1.bf16.msra.mxu1 %v681_v13  ;;  %v670_v20 = vld [vmem:[#allocation5 + $0xc4] ss:$16 sps:$4 sm:$0xff]   ;;  %v672_v21 = vld [vmem:[#allocation5 + $0xc0] ss:$16 sps:$4 sm:$0xff]   ;;  %v688_v22 = vld [vmem:[#allocation5 + $0x68] ss:$16 sps:$4 sm:$0xff]  }
  0x3f   :  { %261 = vmatprep.subr.bf16.mxu0 %v658_v5  ;;  %304 = vmatprep.subr.bf16.mxu1 %v683_v15  ;;  %v676_v23 = vld [vmem:[#allocation5 + $0xe4] ss:$16 sps:$4 sm:$0xff]   ;;  %v689_v24 = vld [vmem:[#allocation5 + $0x8c] ss:$16 sps:$4 sm:$0xff]   ;;  %v691_v25 = vld [vmem:[#allocation5 + $0x88] ss:$16 sps:$4 sm:$0xff]  }
  0x40   :  { %v692_v26 = vld [vmem:[#allocation5 + $0xac] ss:$16 sps:$4 sm:$0xff]   ;;  %v678_v27 = vld [vmem:[#allocation5 + $0xe0] ss:$16 sps:$4 sm:$0xff]   ;;  %v694_v28 = vld [vmem:[#allocation5 + $0xa8] ss:$16 sps:$4 sm:$0xff]  }
  0x41   :  { %v695_v30 = vld [vmem:[#allocation5 + $0xcc] ss:$16 sps:$4 sm:$0xff]   ;;  %v697_v31 = vld [vmem:[#allocation5 + $0xc8] ss:$16 sps:$4 sm:$0xff]   ;;  %v701_v34 = vld [vmem:[#allocation7 + $0x40] sm:$0xff]   ;;  %s835_s2 = smov [#allocation8]  }
  0x42   :  { %262 = vmatpush1.bf16.msra.mxu0 %v660_v6  ;;  %305 = vmatpush1.bf16.msra.mxu1 %v685_v17  ;;  %v698_v32 = vld [vmem:[#allocation5 + $0xec] ss:$16 sps:$4 sm:$0xff]   ;;  %v700_v33 = vld [vmem:[#allocation5 + $0xe8] ss:$16 sps:$4 sm:$0xff]   ;;  %v702_v35 = vld [vmem:[#allocation7] sm:$0xff]   ;;  %s553_s23 = sshll.u32 %s835_s2, 4  ;;  %s554_s23 = int_to_ptr.vmem [resolvable:$true] %s553_s23 }
  0x43   :  { %263 = vmatprep.subr.bf16.mxu0 %v661_v7  ;;  %306 = vmatprep.subr.bf16.mxu1 %v686_v18  ;;  %v703_v36 = vld [vmem:[#allocation7 + $0x48] sm:$0xff]   ;;  %v705_v38 = vld [vmem:[#allocation7 + $0x50] sm:$0xff]   ;;  %v707_v40 = vld [vmem:[#allocation7 + $0x58] sm:$0xff]   ;;  %s799_s24 = scalar_lea.vmem %s554_s23, 256  ;;  %p804_p11 = scmp.lt.s32.totalorder %s554_s23, %s554_s23 }
  0x44   :  { %v704_v37 = vld [vmem:[#allocation7 + $0x8] sm:$0xff]   ;;  %v706_v39 = vld [vmem:[#allocation7 + $0x10] sm:$0xff]   ;;  %v708_v41 = vld [vmem:[#allocation7 + $0x18] sm:$0xff]   ;;  %p800_p10 = scmp.ne.s32.totalorder %s554_s23, %s799_s24  ;;  %p805_p12 = scmp.lt.s32.totalorder %s799_s24, %s799_s24 }
  0x45   :  { %v709_v42 = vld [vmem:[#allocation7 + $0x60] sm:$0xff]   ;;  %v711_v44 = vld [vmem:[#allocation7 + $0x68] sm:$0xff]   ;;  %v713_v46 = vld [vmem:[#allocation7 + $0x70] sm:$0xff]  }
  0x46   :  { %264 = vmatpush1.bf16.msra.mxu0 %v663_v10  ;;  %307 = vmatpush1.bf16.msra.mxu1 %v688_v22  ;;  %v710_v43 = vld [vmem:[#allocation7 + $0x20] sm:$0xff]   ;;  %v712_v45 = vld [vmem:[#allocation7 + $0x28] sm:$0xff]   ;;  %v714_v47 = vld [vmem:[#allocation7 + $0x30] sm:$0xff]   ;;  %p806_p13 = por %p805_p12, %p804_p11 }
  0x47   :  { %265 = vmatprep.subr.bf16.mxu0 %v664_v11  ;;  %308 = vmatprep.subr.bf16.mxu1 %v689_v24  ;;  %v715_v48 = vld [vmem:[#allocation7 + $0x78] sm:$0xff]  }
  0x48   :  { %v716_v49 = vld [vmem:[#allocation7 + $0x38] sm:$0xff]   ;;  %p807_p0 = pnand %p806_p13, %p800_p10 }
  0x4a   :  { %266 = vmatpush1.bf16.msra.mxu0 %v666_v14  ;;  %309 = vmatpush1.bf16.msra.mxu1 %v691_v25 }
  0x4b   :  { %267 = vmatprep.subr.bf16.mxu0 %v667_v16  ;;  %310 = vmatprep.subr.bf16.mxu1 %v692_v26 }
  0x4e   :  { %268 = vmatpush1.bf16.msra.mxu0 %v669_v19  ;;  %311 = vmatpush1.bf16.msra.mxu1 %v694_v28 }
  0x4f   :  { %269 = vmatprep.subr.bf16.mxu0 %v670_v20  ;;  %312 = vmatprep.subr.bf16.mxu1 %v695_v30 }
  0x52   :  { %270 = vmatpush1.bf16.msra.mxu0 %v672_v21  ;;  %313 = vmatpush1.bf16.msra.mxu1 %v697_v31 }
  0x53   :  { %271 = vmatprep.subr.bf16.mxu0 %v676_v23  ;;  %314 = vmatprep.subr.bf16.mxu1 %v698_v32 }
  0x56   :  { %272 = vmatpush1.bf16.msra.mxu0 %v678_v27  ;;  %315 = vmatpush1.bf16.msra.mxu1 %v700_v33 }
  0x57   :  { %619 = vmatprep.subr.bf16.mxu0 %v701_v34 }
  0x59   :  { %290 = vmatmul.mubr.bf16.vlgmr.msra.gmra.mrb[0].mxu0 %v682_v29  ;;  %333 = vmatmul.mubr.bf16.vlgmr.msra.gmra.mrb[0].mxu1 %v682_v29 }
  0x5a   :  { %620 = vmatpush3.bf16.msra.mxu0 %v702_v35 }
  0x5b   :  { %621 = vmatprep.subr.bf16.mxu0 %v703_v36 }
  0x5e   :  { %622 = vmatpush3.bf16.msra.mxu0 %v704_v37 }
  0x5f   :  { %623 = vmatprep.subr.bf16.mxu0 %v705_v38 }
  0x62   :  { %624 = vmatpush3.bf16.msra.mxu0 %v706_v39 }
  0x63   :  { %625 = vmatprep.subr.bf16.mxu0 %v707_v40 }
  0x66   :  { %626 = vmatpush3.bf16.msra.mxu0 %v708_v41 }
  0x67   :  { %627 = vmatprep.subr.bf16.mxu0 %v709_v42 }
  0x6a   :  { %628 = vmatpush3.bf16.msra.mxu0 %v710_v43 }
  0x6b   :  { %629 = vmatprep.subr.bf16.mxu0 %v711_v44 }
  0x6e   :  { %630 = vmatpush3.bf16.msra.mxu0 %v712_v45 }
  0x6f   :  { %631 = vmatprep.subr.bf16.mxu0 %v713_v46 }
  0x72   :  { %632 = vmatpush3.bf16.msra.mxu0 %v714_v47 }
  0x73   :  { %633 = vmatprep.subr.bf16.mxu0 %v715_v48 }
  0x76   :  { %634 = vmatpush3.bf16.msra.mxu0 %v716_v49 }
 0x12c   :  { %v291_v50 = vpop.f32.mrb[0].mxu0  ;;  %v334_v58 = vpop.f32.mrb[0].mxu1 }
 0x12d   :  { %v599_v51 = vmul.f32 -1.442695, %v291_v50  ;;  %v293_v52 = vpop.f32.mrb[1].mxu0  ;;  %v336_v59 = vpop.f32.mrb[1].mxu1 }
 0x12e   :  { %v600_v53 = vmul.f32 -1.442695, %v293_v52  ;;  %v295_v54 = vpop.f32.mrb[2].mxu0  ;;  %v338_v60 = vpop.f32.mrb[2].mxu1 }
 0x12f   :  { %717 = vpow2.f32 %v599_v51  ;;  %v601_v55 = vmul.f32 -1.442695, %v295_v54  ;;  %v297_v56 = vpop.f32.mrb[3].mxu0  ;;  %v340_v62 = vpop.f32.mrb[3].mxu1 }
 0x130   :  { %719 = vpow2.f32 %v600_v53  ;;  %v602_v57 = vmul.f32 -1.442695, %v297_v56 }
 0x131   :  { %721 = vpow2.f32 %v601_v55 }
 0x132   :  { %723 = vpow2.f32 %v602_v57 }
 0x139   :  { %v718_v61 = vpop.eup %717 }
 0x13a   :  { %v720_v63 = vpop.eup %719  ;;  %v355_v0 = vadd.f32 1.0, %v718_v61 }
 0x13b   :  { %v722_v1 = vpop.eup %721  ;;  %v356_v2 = vadd.f32 1.0, %v720_v63 }
 0x13c   :  { %v724_v3 = vpop.eup %723  ;;  %725 = vrcp.f32 %v355_v0  ;;  %v357_v4 = vadd.f32 1.0, %v722_v1 }
 0x13d   :  { %727 = vrcp.f32 %v356_v2  ;;  %v358_v5 = vadd.f32 1.0, %v724_v3 }
 0x13e   :  { %729 = vrcp.f32 %v357_v4 }
 0x13f   :  { %731 = vrcp.f32 %v358_v5 }
 0x146   :  { %v726_v6 = vpop.eup %725 }
 0x147   :  { %v728_v7 = vpop.eup %727  ;;  %v367_v8 = vmul.f32 %v726_v6, %v291_v50 }
 0x148   :  { %v730_v9 = vpop.eup %729  ;;  %v368_v10 = vmul.f32 %v728_v7, %v293_v52 }
 0x149   :  { %v732_v11 = vpop.eup %731  ;;  %v369_v12 = vmul.f32 %v730_v9, %v295_v54  ;;  %v371_v13 = vmul.f32 %v367_v8, %v334_v58 }
 0x14a   :  { %v370_v14 = vmul.f32 %v732_v11, %v297_v56  ;;  %v372_v15 = vmul.f32 %v368_v10, %v336_v59 }
 0x14b   :  { %v373_v16 = vmul.f32 %v369_v12, %v338_v60 }
 0x14c   :  { %v374_v17 = vmul.f32 %v370_v14, %v340_v62 }
 0x14d   :  { %v375_v18 = vpack.c.bf16 %v373_v16, %v371_v13 }
 0x14e   :  { %v376_v19 = vpack.c.bf16 %v374_v17, %v372_v15 }
 0x150   :  { %537 = vmatprep.mubr.bf16.mxu0 %v376_v19 }
 0x151   :  { %538 = vmatmul.mubr.bf16.vlgmr.msra.gmra.mrb[4].mxu0 %v375_v18 }
 0x224   :  { %v635_v20 = vpop.f32.mrb[4].mxu0 }
 0x225   :  { %v636_v21 = vpop.f32.mrb[5].mxu0 }
 0x226   :  { %v637_v22 = vadd.f32 %v636_v21, %v635_v20  ;;  %v638_v23 = vpop.f32.mrb[6].mxu0 }
 0x227   :  { %v639_v24 = vpop.f32.mrb[7].mxu0 }
 0x228   :  { %546 = vst [vmem:[#allocation8] sm:$0xff] %v637_v22  ;;  %v640_v25 = vadd.f32 %v639_v24, %v638_v23 }
 0x22a   :  { %547 = vst [vmem:[#allocation8 + $0x8] sm:$0xff] %v640_v25 }
 0x22b   :  { %810 = shalt.err (!%p807_p0)
}
 0x22c   :  { %s811_s27 = scalar_lea.hbm %s909_s3, 256 }
 0x22d   :  { %p812_p1 = scmp.ne.s32.totalorder %s909_s3, %s811_s27  ;;  %p815_p2 = scmp.lt.u32.totalorder %s811_s27, %s909_s3 }
 0x22f   :  { %p817_p3 = pnand %p815_p2, %p812_p1 }
 0x231   :  { %820 = shalt.err (!%p817_p3)
}
 0x232   :  { %s836_s5 = smov 128   ;;  %s837_s6 = smov 8  }
 0x233   :  { %559 = dma.vmem_to_hbm [thread:$0]  %s554_s23, 256, %s909_s3, [#allocation4], %s836_s5, %s836_s5, %s837_s6  }
 0x234   :  { %825 = dma.done.wait [#allocation4], 256  }
 0x235   :  { %826 = vsyncadd [#allocation4], 4294967040 }
 0x236   :  { %563 = vsyncpa [#allocation3], 1 }
 0x237   :  { %564 = vsyncpa [#allocation6], 1 }
 0x238   :  { %565 = vsyncpa [#allocation4], 1 }

</bundles_post_ra>
